<compile_context>
chip_gen: v5e
topology: v5e:2x2
jax: 0.10.0
libtpu: 0.0.40
codegen_flags: <defaults>
</compile_context>

<pallas_src>
import functools

import jax
import jax.numpy as jnp
from jax.experimental import pallas as pl
from jax.experimental.pallas import tpu as pltpu


# ---------------------------------------------------------------------------
# Per-generation VMEM sizing.
# ---------------------------------------------------------------------------
def _vmem_budget_and_limit():
    cap = None
    try:
        cap = pltpu.get_tpu_info().vmem_capacity_bytes
    except Exception:
        cap = None
    if cap is not None and cap >= 100 * 1024 * 1024:     # v5e / v6e: 128 MiB
        return 48 * 1024 * 1024, 96 * 1024 * 1024
    # v7x (64 MiB physical) or unknown: conservative, leave headroom.
    return 24 * 1024 * 1024, 48 * 1024 * 1024


def _sublane_pack(dtype):
    return {4: 8, 2: 16, 1: 32}.get(jnp.dtype(dtype).itemsize, 8)


def _choose_row_tile(rows, d_total, dtype, budget_bytes):
    """Largest sublane-pack-multiple row tile whose double-buffered set fits."""
    pack = _sublane_pack(dtype)
    itemsize = jnp.dtype(dtype).itemsize
    # 2 buffers * (sum of input blocks + output block) bytes per row.
    per_row = 2 * 2 * d_total * itemsize
    ts = budget_bytes // max(per_row, 1)
    ts = max(pack, (ts // pack) * pack)
    if ts >= rows:
        return rows          # full-extent block is always legal under (8,128)
    return ts


# ---------------------------------------------------------------------------
# Kernels.
# ---------------------------------------------------------------------------
def _concat_dma_kernel(*refs, dims, offsets):
    """Pure HBM->HBM strided-DMA concat: one copy per modality, then wait."""
    n = len(dims)
    in_refs = refs[:n]
    out_ref = refs[n]
    sem = refs[n + 1]
    copies = []
    for i, (in_ref, off, d) in enumerate(zip(in_refs, offsets, dims)):
        cp = pltpu.make_async_copy(in_ref, out_ref.at[:, :, off:off + d],
                                   sem.at[i])
        cp.start()
        copies.append(cp)
    for cp in copies:
        cp.wait()


def _concat_vmem_kernel(*refs, dims, offsets):
    """Blocked VMEM path: per-modality slice stores into the full-width block."""
    out_ref = refs[-1]
    for in_ref, off, d in zip(refs[:-1], offsets, dims):
        out_ref[:, off:off + d] = in_ref[...]


# ---------------------------------------------------------------------------
# Wrapper.
# ---------------------------------------------------------------------------
def concat_early(modalities, *, _row_tile=None):
    """Concatenate an iterable of [B, S, D_i] arrays along dim=2 (feature)."""
    modalities = tuple(modalities)
    assert modalities, "need at least one modality"
    B, S = modalities[0].shape[:2]
    dtype = modalities[0].dtype
    for m in modalities:
        assert m.ndim == 3, "ConcatEarly expects rank-3 [B, S, D_i] inputs"
        assert m.shape[:2] == (B, S), "leading dims must match for cat(dim=2)"
        assert m.dtype == dtype, "dtypes must match for cat(dim=2)"

    dims = tuple(int(m.shape[2]) for m in modalities)
    offsets = []
    acc = 0
    for d in dims:
        offsets.append(acc)
        acc += d
    d_total = acc
    offsets = tuple(offsets)
    itemsize = jnp.dtype(dtype).itemsize

    # ------------------------------------------------------------------
    # Fast path: descriptor-only HBM->HBM strided DMA.  Requires the slice
    # boundaries to be lane-aligned (128-multiples) so the sliced destination
    # is tile-aligned, and per-row chunks >= 512 B so DMA efficiency is high.
    # ------------------------------------------------------------------
    use_dma = (_row_tile is None
               and all(d % 128 == 0 for d in dims)
               and all(d * itemsize >= 512 for d in dims))
    if use_dma:
        kernel = functools.partial(_concat_dma_kernel, dims=dims, offsets=offsets)
        return pl.pallas_call(
            kernel,
            out_shape=jax.ShapeDtypeStruct((B, S, d_total), dtype),
            in_specs=[pl.BlockSpec(memory_space=pl.ANY)] * len(dims),
            out_specs=pl.BlockSpec(memory_space=pl.ANY),
            scratch_shapes=[pltpu.SemaphoreType.DMA((len(dims),))],
        )(*modalities)

    # ------------------------------------------------------------------
    # Fallback: blocked VMEM pipeline over flattened rows [B*S, D_i].
    # Flattening guarantees many grid steps even for B=1 and removes the
    # S-divisibility problem (partial boundary block is allowed via cdiv).
    # ------------------------------------------------------------------
    rows = B * S
    budget, limit = _vmem_budget_and_limit()
    ts = _row_tile if _row_tile is not None else _choose_row_tile(
        rows, d_total, dtype, budget)

    flat = [m.reshape(rows, d) for m, d in zip(modalities, dims)]
    kernel = functools.partial(_concat_vmem_kernel, dims=dims, offsets=offsets)

    in_specs = [pl.BlockSpec((ts, d), lambda i: (i, 0)) for d in dims]
    out_spec = pl.BlockSpec((ts, d_total), lambda i: (i, 0))

    out_flat = pl.pallas_call(
        kernel,
        out_shape=jax.ShapeDtypeStruct((rows, d_total), dtype),
        grid_spec=pltpu.PrefetchScalarGridSpec(
            num_scalar_prefetch=0,
            grid=(pl.cdiv(rows, ts),),
            in_specs=in_specs,
            out_specs=out_spec,
        ),
        compiler_params=pltpu.CompilerParams(
            dimension_semantics=("parallel",),
            vmem_limit_bytes=limit,
        ),
    )(*flat)
    return out_flat.reshape(B, S, d_total)


if __name__ == "__main__":
    key = jax.random.PRNGKey(0)
    keys = jax.random.split(key, 7)

    # Test 1: small, non-128-aligned feature widths -> VMEM slice-store path.
    B, S = 2, 8
    x1 = jax.random.normal(keys[0], (B, S, 32), dtype=jnp.float32)
    x2 = jax.random.normal(keys[1], (B, S, 16), dtype=jnp.float32)
    x3 = jax.random.normal(keys[2], (B, S, 48), dtype=jnp.float32)
    out = jax.block_until_ready(concat_early([x1, x2, x3]))
    ref = jnp.concatenate([x1, x2, x3], axis=2)
    assert out.shape == (B, S, 32 + 16 + 48), out.shape
    assert out.dtype == x1.dtype
    assert jnp.array_equal(out, ref), "mismatch vs jnp.concatenate reference"

    # Test 2: 128-multiple widths -> pure HBM->HBM strided-DMA path.
    B2, S2 = 2, 16
    y1 = jax.random.normal(keys[3], (B2, S2, 128), dtype=jnp.float32)
    y2 = jax.random.normal(keys[4], (B2, S2, 256), dtype=jnp.float32)
    out2 = jax.block_until_ready(concat_early([y1, y2]))
    ref2 = jnp.concatenate([y1, y2], axis=2)
    assert out2.shape == (B2, S2, 384), out2.shape
    assert out2.dtype == y1.dtype
    assert jnp.array_equal(out2, ref2), "mismatch vs jnp.concatenate reference"

    # Test 3: awkward S with a forced small row tile -> partial boundary block.
    B3, S3 = 2, 10
    z1 = jax.random.normal(keys[5], (B3, S3, 24), dtype=jnp.float32)
    z2 = jax.random.normal(keys[6], (B3, S3, 40), dtype=jnp.float32)
    out3 = jax.block_until_ready(concat_early([z1, z2], _row_tile=8))
    ref3 = jnp.concatenate([z1, z2], axis=2)
    assert out3.shape == (B3, S3, 64), out3.shape
    assert out3.dtype == z1.dtype
    assert jnp.array_equal(out3, ref3), "mismatch vs jnp.concatenate reference"

    print("KERNEL_OK")
</pallas_src>

<mosaic_0001>
module attributes {stable_mosaic.version = 11 : i64} {
  func.func @_concat_vmem_kernel(%arg0: i32, %arg1: memref<16x32xf32, #tpu.memory_space<vmem>>, %arg2: memref<16x16xf32, #tpu.memory_space<vmem>>, %arg3: memref<16x48xf32, #tpu.memory_space<vmem>>, %arg4: memref<16x96xf32, #tpu.memory_space<vmem>>) attributes {dimension_semantics = [#tpu.dimension_semantics<parallel>], iteration_bounds = array<i64: 1>, scalar_prefetch = 0 : i64, scratch_operands = 0 : i64, tpu.core_type = #tpu.core_type<tc>, window_params = [{transform_indices = @transform_0, window_bounds = array<i64: 16, 32>}, {transform_indices = @transform_1, window_bounds = array<i64: 16, 16>}, {transform_indices = @transform_2, window_bounds = array<i64: 16, 48>}, {transform_indices = @transform_3, window_bounds = array<i64: 16, 96>}]} {
    %c0 = arith.constant 0 : index
    %c0_0 = arith.constant 0 : index
    %0 = vector.load %arg1[%c0, %c0_0] : memref<16x32xf32, #tpu.memory_space<vmem>>, vector<16x32xf32>
    %c0_1 = arith.constant 0 : index
    %c0_2 = arith.constant 0 : index
    %1 = vector.load %arg4[%c0_1, %c0_2] : memref<16x96xf32, #tpu.memory_space<vmem>>, vector<16x32xf32>
    tpu.vector_store %arg4[%c0_1, %c0_2], %0 {strides = array<i32>} : memref<16x96xf32, #tpu.memory_space<vmem>>, vector<16x32xf32>,
    %c0_3 = arith.constant 0 : index
    %c0_4 = arith.constant 0 : index
    %2 = vector.load %arg2[%c0_3, %c0_4] : memref<16x16xf32, #tpu.memory_space<vmem>>, vector<16x16xf32>
    %c0_5 = arith.constant 0 : index
    %c32 = arith.constant 32 : index
    %3 = vector.load %arg4[%c0_5, %c32] : memref<16x96xf32, #tpu.memory_space<vmem>>, vector<16x16xf32>
    tpu.vector_store %arg4[%c0_5, %c32], %2 {strides = array<i32>} : memref<16x96xf32, #tpu.memory_space<vmem>>, vector<16x16xf32>,
    %c0_6 = arith.constant 0 : index
    %c0_7 = arith.constant 0 : index
    %4 = vector.load %arg3[%c0_6, %c0_7] : memref<16x48xf32, #tpu.memory_space<vmem>>, vector<16x48xf32>
    %c0_8 = arith.constant 0 : index
    %c48 = arith.constant 48 : index
    %5 = vector.load %arg4[%c0_8, %c48] : memref<16x96xf32, #tpu.memory_space<vmem>>, vector<16x48xf32>
    tpu.vector_store %arg4[%c0_8, %c48], %4 {strides = array<i32>} : memref<16x96xf32, #tpu.memory_space<vmem>>, vector<16x48xf32>,
    return
  }
  func.func @transform_0(%arg0: i32) -> (i32, i32) {
    %c0_i32 = arith.constant 0 : i32
    %c0_i32_0 = arith.constant 0 : i32
    return %arg0, %c0_i32 : i32, i32
  }
  func.func @transform_1(%arg0: i32) -> (i32, i32) {
    %c0_i32 = arith.constant 0 : i32
    %c0_i32_0 = arith.constant 0 : i32
    return %arg0, %c0_i32 : i32, i32
  }
  func.func @transform_2(%arg0: i32) -> (i32, i32) {
    %c0_i32 = arith.constant 0 : i32
    %c0_i32_0 = arith.constant 0 : i32
    return %arg0, %c0_i32 : i32, i32
  }
  func.func @transform_3(%arg0: i32) -> (i32, i32) {
    %c0_i32 = arith.constant 0 : i32
    %c0_i32_0 = arith.constant 0 : i32
    return %arg0, %c0_i32 : i32, i32
  }
}

</mosaic_0001>

<bundles_post_ra>
// kernel: tpu_custom_call.1
= control target key start
LH: loop header
LB: loop body
LE: loop exit
PB: predicated region body
PF: predicated region fallthrough
CT: control target
= control target key end

     0   :  { %8 = vsyncpa [#allocation3], 0  ;;  %s275_s0 = inlined_call_operand.hbm [shape: f32[16,32], index: 0, kind: input, shape index: {}]   ;;  %s276_s1 = inlined_call_operand.hbm [shape: f32[16,16], index: 1, kind: input, shape index: {}]   ;;  %s277_s2 = inlined_call_operand.hbm [shape: f32[16,48], index: 2, kind: input, shape index: {}]   ;;  %s278_s3 = inlined_call_operand.hbm [shape: f32[16,96], index: 3, kind: output, shape index: {}]  }
   0x1   :  { %9 = vsyncpa [#allocation6], 0 }
   0x2   :  { %10 = vsyncpa [#allocation4], 0  ;;  %s28_s14 = sshll.u32 %s276_s1, 4  ;;  %s223_s15 = smov [#allocation5]   ;;  %s29_s14 = int_to_ptr.hbm [resolvable:$true] %s28_s14 }
   0x3   :  { %s30_s16 = sshll.u32 %s223_s15, 4  ;;  %s15_s19 = sshll.u32 %s275_s0, 4  ;;  %s31_s16 = int_to_ptr.vmem [resolvable:$true] %s30_s16  ;;  %s16_s19 = int_to_ptr.hbm [resolvable:$true] %s15_s19 }
   0x4   :  { %s224_s20 = smov 128   ;;  %s225_s21 = smov 8  }
   0x5   :  { %36 = dma.hbm_to_vmem [thread:$0]  %s29_s14, 256, %s31_s16, [#allocation6], %s224_s20, %s224_s20, %s225_s21  }
   0x6   :  { %s226_s22 = smov [#allocation2]   ;;  %s41_s1 = sshll.u32 %s277_s2, 4  ;;  %s42_s1 = int_to_ptr.hbm [resolvable:$true] %s41_s1 }
   0x7   :  { %s17_s23 = sshll.u32 %s226_s22, 4  ;;  %s227_s0 = smov [#allocation7]   ;;  %s18_s23 = int_to_ptr.vmem [resolvable:$true] %s17_s23 }
   0x8   :  { %23 = dma.hbm_to_vmem [thread:$0]  %s16_s19, 256, %s18_s23, [#allocation3], %s224_s20, %s224_s20, %s225_s21  }
   0x9   :  { %s43_s26 = sshll.u32 %s227_s0, 4  ;;  %s44_s26 = int_to_ptr.vmem [resolvable:$true] %s43_s26 }
   0xa   :  { %49 = dma.hbm_to_vmem [thread:$0]  %s42_s1, 256, %s44_s26, [#allocation6], %s224_s20, %s224_s20, %s225_s21  }
   0xb   :  { %217 = dma.done.wait [#allocation3], 256  }
   0xc   :  { %218 = vsyncadd [#allocation3], 4294967040 }
   0xd   :  { %219 = dma.done.wait [#allocation6], 512  }
   0xe   :  { %220 = vsyncadd [#allocation6], 4294966784  ;;  %v67_v0 = vld [vmem:[#allocation5] sm:$0xff]  ;;  %v80_v1 = vld [vmem:[#allocation7] sm:$0xff]  ;;  %s228_s2 = smov 32   ;;  %s229_s27 = smov 48  }
   0xf   :  { %71 = vrot.lane.b32.xlu0 %v67_v0, %s228_s2  ;;  %84 = vrot.lane.b32.xlu1 %v80_v1, %s229_s27  ;;  %v68_v2 = vld [vmem:[#allocation5 + $0x8] sm:$0xff]  ;;  %v81_v3 = vld [vmem:[#allocation7 + $0x8] sm:$0xff]  ;;  %vm64_vm0 = vcmask 261120   ;;  %v62_v4 = vld [vmem:[#allocation2] sm:$0xff]  ;;  %vm77_vm1 = vcmask 392448   ;;  %vm90_vm2 = vcmask 785792  }
  0x10   :  { %65 = vst.msk [vmem:[#allocation8] sm:$0xff] %vm64_vm0, %v62_v4  ;;  %v63_v5 = vld [vmem:[#allocation2 + $0x8] sm:$0xff]  ;;  %s230_s28 = smov [#allocation8]   ;;  %s99_s5 = sshll.u32 %s278_s3, 4  ;;  %s100_s5 = int_to_ptr.hbm [resolvable:$true] %s99_s5 }
  0x11   :  { %66 = vst.msk [vmem:[#allocation8 + $0x8] sm:$0xff] %vm64_vm0, %v63_v5  ;;  %s97_s29 = sshll.u32 %s230_s28, 4  ;;  %s98_s29 = int_to_ptr.vmem [resolvable:$true] %s97_s29 }
  0x17   :  { %73 = vrot.lane.b32.xlu0 %v68_v2, %s228_s2  ;;  %86 = vrot.lane.b32.xlu1 %v81_v3, %s229_s27 }
  0x81   :  { %v72_v6 = vpop.permute.xlu0 %71  ;;  %v85_v7 = vpop.permute.xlu1 %84 }
  0x82   :  { %78 = vst.msk [vmem:[#allocation8] sm:$0xff] %vm77_vm1, %v72_v6 }
  0x83   :  { %91 = vst.msk [vmem:[#allocation8] sm:$0xff] %vm90_vm2, %v85_v7 }
  0x89   :  { %v74_v8 = vpop.permute.xlu0 %73  ;;  %v87_v9 = vpop.permute.xlu1 %86 }
  0x8a   :  { %79 = vst.msk [vmem:[#allocation8 + $0x8] sm:$0xff] %vm77_vm1, %v74_v8 }
  0x8b   :  { %92 = vst.msk [vmem:[#allocation8 + $0x8] sm:$0xff] %vm90_vm2, %v87_v9 }
  0x8c   :  { %105 = dma.vmem_to_hbm [thread:$0]  %s98_s29, 256, %s100_s5, [#allocation4], %s224_s20, %s224_s20, %s225_s21  }
  0x8d   :  { %221 = dma.done.wait [#allocation4], 256  }
  0x8e   :  { %222 = vsyncadd [#allocation4], 4294967040 }
  0x8f   :  { %110 = vsyncpa [#allocation3], 1 }
  0x90   :  { %111 = vsyncpa [#allocation6], 1 }
  0x91   :  { %112 = vsyncpa [#allocation4], 1 }

</bundles_post_ra>
